<compile_context>
chip_gen: v6e
topology: v6e:2x2x1
jax: 0.10.0
libtpu: 0.0.40
codegen_flags: <defaults>
</compile_context>

<pallas_src>
import math
import functools

import jax
import jax.numpy as jnp
from jax import lax
from jax.experimental import pallas as pl
from jax.experimental.pallas import tpu as pltpu

_LANE = 128
_SUBLANE = 8


def _round_up(n, m):
    return (n + m - 1) // m * m


def _divisor_tile(dim, quantum, cap):
    """Largest multiple-of-`quantum` divisor of `dim` that is <= cap; else the full dim."""
    if dim % quantum == 0:
        t = min(cap, dim)
        t -= t % quantum
        while t >= quantum:
            if dim % t == 0:
                return t
            t -= quantum
    return dim


def _implicit_gemm_conv_kernel(x_ref, w_ref, b_ref, out_ref, acc_ref, *,
                               KH, KW, Wp, wscale):
    """One (batch, C_out-tile, C_in-tile) grid step of the implicit-GEMM conv.

    x_ref:   (TCI, N_in)        bf16 flat-spatial slab of one image (zero-padded lanes)
    w_ref:   (KH*KW, TCO, TCI)  bf16 per-tap weight slices (raw, unscaled)
    b_ref:   (TCO, 1)           f32 bias (channel on sublanes -> cheap lane broadcast)
    out_ref: (TCO, N_out)       stride-1 conv output, flat spatial (lane-dense)
    acc_ref: (TCO, N_out)       f32 accumulator; persists across the C_in grid axis
    """
    ci = pl.program_id(2)

    @pl.when(ci == 0)
    def _():
        acc_ref[...] = jnp.zeros_like(acc_ref)

    n_out = out_ref.shape[-1]
    # In-kernel im2col: each filter tap is a statically lane-shifted window of the x slab.
    for kh in range(KH):
        for kw in range(KW):
            off = kh * Wp + kw                       # static lane offset of this tap
            acc_ref[...] += jnp.dot(
                w_ref[kh * KW + kw],                 # (TCO, TCI)   bf16
                x_ref[:, off:off + n_out],           # (TCI, N_out) bf16
                preferred_element_type=jnp.float32)  # single-pass MXU, f32 accumulate

    @pl.when(ci == pl.num_programs(2) - 1)
    def _():
        # Equalized-lr scale + bias folded into the epilogue (touches only (TCO, N_out)).
        out_ref[...] = (acc_ref[...] * wscale + b_ref[...]).astype(out_ref.dtype)


def scaled_conv2d(x, weight, bias, *, stride=1, padding=0):
    """StyleGAN ScaledConv2d forward.

    x:      (B, C_in, H, W)        NCHW
    weight: (C_out, C_in, KH, KW)  raw (`weight_orig`) weights
    bias:   (C_out,)
    """
    B, C_in, H, W = x.shape
    C_out, C_in_w, KH, KW = weight.shape
    assert C_in_w == C_in
    assert bias.shape == (C_out,)

    fan_in = C_in * KH * KW                     # weight.size(1) * weight[0][0].numel()
    wscale = math.sqrt(2.0 / fan_in)
    out_dtype = x.dtype

    if padding:
        x = jnp.pad(x, ((0, 0), (0, 0), (padding, padding), (padding, padding)))
    Hp, Wp = x.shape[2], x.shape[3]
    H1, W1 = Hp - KH + 1, Wp - KW + 1           # stride-1 output extent
    H_out = (Hp - KH) // stride + 1
    W_out = (Wp - KW) // stride + 1
    KHW = KH * KW

    # Implicit-GEMM sizing: the kernel emits the stride-1 conv at flat positions
    # p = ho*Wp + wo; the last KW-1 columns of each row are row-wrap garbage (trimmed below).
    n_valid = H1 * Wp
    N_out = _round_up(n_valid, _LANE)
    N_in = _round_up((KH - 1) * Wp + (KW - 1) + N_out, _LANE)

    # The ONLY wrapper-side pass over x: cast to bf16 + flatten + zero-pad lanes (~1x HBM).
    x_flat = x.reshape(B, C_in, Hp * Wp).astype(jnp.bfloat16)
    x_flat = jnp.pad(x_flat, ((0, 0), (0, 0), (0, N_in - Hp * Wp)))

    # Tiny weight re-layout: (C_out, C_in, KH, KW) -> (KH*KW, C_out, C_in), raw (unscaled).
    w_taps = jnp.transpose(weight, (2, 3, 0, 1)).reshape(KHW, C_out, C_in).astype(jnp.bfloat16)
    b2d = bias.reshape(C_out, 1).astype(jnp.float32)

    # ---- VMEM-aware tile selection: C_out (sublane quantum 8), C_in (lane quantum 128) ----
    TCO = _divisor_tile(C_out, _SUBLANE, 256)   # align MXU m-dim to the systolic array
    TCI = _divisor_tile(C_in, _LANE, 512)

    def vmem_est(tco, tci):                     # double-buffered blocks + accumulator
        x_blk = tci * N_in * 2 * 2
        w_blk = KHW * tco * tci * 2 * 2
        b_blk = tco * 4 * 2
        o_blk = tco * N_out * 4 * 2
        acc = tco * N_out * 4
        return x_blk + w_blk + b_blk + o_blk + acc

    budget = 16 * 2 ** 20                       # fits v5e's 16 MiB default scoped VMEM
    for _ in range(16):
        if vmem_est(TCO, TCI) <= budget:
            break
        new_tci = _divisor_tile(C_in, _LANE, TCI // 2) if TCI > _LANE else TCI
        if new_tci < TCI:
            TCI = new_tci
            continue
        new_tco = _divisor_tile(C_out, _SUBLANE, TCO // 2) if TCO > _SUBLANE else TCO
        if new_tco < TCO:
            TCO = new_tco
            continue
        break  # cannot shrink further (huge spatial); rely on vmem_limit_bytes below

    # Keep >= 2 independent "parallel" work items (megacore sharding / pipelining).
    if B * (C_out // TCO) < 2:
        half = TCO // 2
        if half >= _SUBLANE and half % _SUBLANE == 0 and C_out % half == 0:
            TCO = half

    n_co = C_out // TCO
    n_ci = C_in // TCI
    grid = (B, n_co, n_ci)

    vmem_limit = int(min(max(2 * vmem_est(TCO, TCI), 16 * 2 ** 20), 48 * 2 ** 20))

    kernel = functools.partial(_implicit_gemm_conv_kernel,
                               KH=KH, KW=KW, Wp=Wp, wscale=wscale)

    out_flat = pl.pallas_call(
        kernel,
        out_shape=jax.ShapeDtypeStruct((B, C_out, N_out), out_dtype),
        grid_spec=pltpu.PrefetchScalarGridSpec(
            num_scalar_prefetch=0,
            grid=grid,
            in_specs=[
                # x slab: one image's flat spatial (lane-dense); tiled over C_in only.
                pl.BlockSpec((None, TCI, N_in), lambda b, o, c: (b, c, 0)),
                # per-tap weight slices; tiled over C_out / C_in.
                pl.BlockSpec((KHW, TCO, TCI), lambda b, o, c: (0, o, c)),
                # bias
                pl.BlockSpec((TCO, 1), lambda b, o, c: (o, 0)),
            ],
            out_specs=pl.BlockSpec((None, TCO, N_out), lambda b, o, c: (b, o, 0)),
            scratch_shapes=[pltpu.VMEM((TCO, N_out), jnp.float32)],
        ),
        compiler_params=pltpu.CompilerParams(
            dimension_semantics=("parallel", "parallel", "arbitrary"),
            vmem_limit_bytes=vmem_limit,
        ),
    )(x_flat, w_taps, b2d)

    # Output is already channel-major; trim the row-wrap columns and apply stride (if any).
    out = out_flat[:, :, :n_valid].reshape(B, C_out, H1, Wp)[:, :, :, :W1]
    if stride != 1:
        # TODO(synk): stride>1 is realized by subsampling the stride-1 result (correct but
        #             wasteful; StyleGAN's ScaledConv2d uses stride=1).
        out = out[:, :, ::stride, ::stride]
    assert out.shape == (B, C_out, H_out, W_out)
    return out


if __name__ == "__main__":
    B, C_in, C_out, H, W, KH, KW = 2, 4, 8, 16, 16, 3, 3

    key = jax.random.PRNGKey(0)
    kx, kw_, kb = jax.random.split(key, 3)

    x = jax.random.normal(kx, (B, C_in, H, W), dtype=jnp.float32)
    # ScaledConv2d init: conv.weight.data.normal_(); conv.bias.data.zero_()
    weight = jax.random.normal(kw_, (C_out, C_in, KH, KW), dtype=jnp.float32)
    bias_zero = jnp.zeros((C_out,), dtype=jnp.float32)
    bias_rand = jax.random.normal(kb, (C_out,), dtype=jnp.float32)  # exercise the bias add

    scale = math.sqrt(2.0 / (C_in * KH * KW))

    def ref_conv(xv, wv, bv, stride, padding):
        # Reference on operands rounded to bf16 exactly like the kernel, f32 accumulation.
        xb = xv.astype(jnp.bfloat16).astype(jnp.float32)
        wb = wv.astype(jnp.bfloat16).astype(jnp.float32) * scale
        y = lax.conv_general_dilated(
            xb, wb, window_strides=(stride, stride),
            padding=[(padding, padding), (padding, padding)],
            dimension_numbers=("NCHW", "OIHW", "NCHW"),
            precision=lax.Precision.HIGHEST)
        return y + bv.reshape(1, -1, 1, 1)

    cases = [
        dict(bias=bias_zero, stride=1, padding=0),   # ScaledConv2d default init
        dict(bias=bias_rand, stride=1, padding=1),   # typical StyleGAN 3x3 "same" conv
        dict(bias=bias_rand, stride=2, padding=1),   # strided variant
    ]
    for c in cases:
        out = jax.block_until_ready(
            scaled_conv2d(x, weight, c["bias"], stride=c["stride"], padding=c["padding"]))
        ref = ref_conv(x, weight, c["bias"], c["stride"], c["padding"])
        assert out.shape == ref.shape, (out.shape, ref.shape)
        assert jnp.allclose(out, ref, atol=2e-3, rtol=2e-3), \
            float(jnp.max(jnp.abs(out - ref)))

    print("KERNEL_OK")
</pallas_src>

<mosaic_0001>
module attributes {stable_mosaic.version = 11 : i64} {
  func.func @_implicit_gemm_conv_kernel(%arg0: i32, %arg1: i32, %arg2: i32, %arg3: memref<1x4x384xbf16, #tpu.memory_space<vmem>>, %arg4: memref<9x8x4xbf16, #tpu.memory_space<vmem>>, %arg5: memref<8x1xf32, #tpu.memory_space<vmem>>, %arg6: memref<1x8x256xf32, #tpu.memory_space<vmem>>, %arg7: memref<8x256xf32, #tpu.memory_space<vmem>>) attributes {dimension_semantics = [#tpu.dimension_semantics<parallel>, #tpu.dimension_semantics<parallel>, #tpu.dimension_semantics<arbitrary>], iteration_bounds = array<i64: 2, 1, 1>, scalar_prefetch = 0 : i64, scratch_operands = 1 : i64, tpu.core_type = #tpu.core_type<tc>, window_params = [{transform_indices = @transform_0, window_bounds = array<i64: 1, 4, 384>}, {transform_indices = @transform_1, window_bounds = array<i64: 9, 8, 4>}, {transform_indices = @transform_2, window_bounds = array<i64: 8, 1>}, {transform_indices = @transform_3, window_bounds = array<i64: 1, 8, 256>}]} {
    %c0_i32 = arith.constant 0 : i32
    %0 = arith.cmpi eq, %arg2, %c0_i32 : i32
    %1 = arith.extui %0 : i1 to i32
    %c0_i32_0 = arith.constant 0 : i32
    %2 = arith.cmpi ne, %1, %c0_i32_0 : i32
    scf.if %2 {
      %cst_86 = arith.constant 0.000000e+00 : f32
      %78 = vector.broadcast %cst_86 : f32 to vector<8x256xf32>
      %c0_87 = arith.constant 0 : index
      %c0_88 = arith.constant 0 : index
      %79 = vector.load %arg7[%c0_87, %c0_88] : memref<8x256xf32, #tpu.memory_space<vmem>>, vector<8x256xf32>
      tpu.vector_store %arg7[%c0_87, %c0_88], %78 {strides = array<i32>} : memref<8x256xf32, #tpu.memory_space<vmem>>, vector<8x256xf32>,
    } else {
    }
    %c0 = arith.constant 0 : index
    %c0_1 = arith.constant 0 : index
    %3 = vector.load %arg7[%c0, %c0_1] : memref<8x256xf32, #tpu.memory_space<vmem>>, vector<8x256xf32>
    %c0_2 = arith.constant 0 : index
    %c0_3 = arith.constant 0 : index
    %c0_4 = arith.constant 0 : index
    %4 = vector.load %arg4[%c0_2, %c0_3, %c0_4] : memref<9x8x4xbf16, #tpu.memory_space<vmem>>, vector<1x8x4xbf16>
    %5 = vector.shape_cast %4 : vector<1x8x4xbf16> to vector<8x4xbf16>
    %c0_5 = arith.constant 0 : index
    %c0_6 = arith.constant 0 : index
    %c0_7 = arith.constant 0 : index
    %6 = vector.load %arg3[%c0_5, %c0_6, %c0_7] : memref<1x4x384xbf16, #tpu.memory_space<vmem>>, vector<1x4x256xbf16>
    %7 = vector.shape_cast %6 : vector<1x4x256xbf16> to vector<4x256xbf16>
    %cst = arith.constant dense<0.000000e+00> : vector<8x256xf32>
    %8 = tpu.matmul %5, %7, %cst {dimension_numbers = #tpu.dot_dimension_numbers<[1], [0], [0], [1], [0, 0, 1, 1], [], []>} : vector<8x4xbf16>, vector<4x256xbf16>, vector<8x256xf32> -> vector<8x256xf32>
    %9 = arith.addf %3, %8 : vector<8x256xf32>
    %c0_8 = arith.constant 0 : index
    %c0_9 = arith.constant 0 : index
    %10 = vector.load %arg7[%c0_8, %c0_9] : memref<8x256xf32, #tpu.memory_space<vmem>>, vector<8x256xf32>
    tpu.vector_store %arg7[%c0_8, %c0_9], %9 {strides = array<i32>} : memref<8x256xf32, #tpu.memory_space<vmem>>, vector<8x256xf32>,
    %c0_10 = arith.constant 0 : index
    %c0_11 = arith.constant 0 : index
    %11 = vector.load %arg7[%c0_10, %c0_11] : memref<8x256xf32, #tpu.memory_space<vmem>>, vector<8x256xf32>
    %c1 = arith.constant 1 : index
    %c0_12 = arith.constant 0 : index
    %c0_13 = arith.constant 0 : index
    %12 = vector.load %arg4[%c1, %c0_12, %c0_13] : memref<9x8x4xbf16, #tpu.memory_space<vmem>>, vector<1x8x4xbf16>
    %13 = vector.shape_cast %12 : vector<1x8x4xbf16> to vector<8x4xbf16>
    %c0_14 = arith.constant 0 : index
    %c0_15 = arith.constant 0 : index
    %c1_16 = arith.constant 1 : index
    %14 = vector.load %arg3[%c0_14, %c0_15, %c1_16] : memref<1x4x384xbf16, #tpu.memory_space<vmem>>, vector<1x4x256xbf16>
    %15 = vector.shape_cast %14 : vector<1x4x256xbf16> to vector<4x256xbf16>
    %cst_17 = arith.constant dense<0.000000e+00> : vector<8x256xf32>
    %16 = tpu.matmul %13, %15, %cst_17 {dimension_numbers = #tpu.dot_dimension_numbers<[1], [0], [0], [1], [0, 0, 1, 1], [], []>} : vector<8x4xbf16>, vector<4x256xbf16>, vector<8x256xf32> -> vector<8x256xf32>
    %17 = arith.addf %11, %16 : vector<8x256xf32>
    %c0_18 = arith.constant 0 : index
    %c0_19 = arith.constant 0 : index
    %18 = vector.load %arg7[%c0_18, %c0_19] : memref<8x256xf32, #tpu.memory_space<vmem>>, vector<8x256xf32>
    tpu.vector_store %arg7[%c0_18, %c0_19], %17 {strides = array<i32>} : memref<8x256xf32, #tpu.memory_space<vmem>>, vector<8x256xf32>,
    %c0_20 = arith.constant 0 : index
    %c0_21 = arith.constant 0 : index
    %19 = vector.load %arg7[%c0_20, %c0_21] : memref<8x256xf32, #tpu.memory_space<vmem>>, vector<8x256xf32>
    %c2 = arith.constant 2 : index
    %c0_22 = arith.constant 0 : index
    %c0_23 = arith.constant 0 : index
    %20 = vector.load %arg4[%c2, %c0_22, %c0_23] : memref<9x8x4xbf16, #tpu.memory_space<vmem>>, vector<1x8x4xbf16>
    %21 = vector.shape_cast %20 : vector<1x8x4xbf16> to vector<8x4xbf16>
    %c0_24 = arith.constant 0 : index
    %c0_25 = arith.constant 0 : index
    %c2_26 = arith.constant 2 : index
    %22 = vector.load %arg3[%c0_24, %c0_25, %c2_26] : memref<1x4x384xbf16, #tpu.memory_space<vmem>>, vector<1x4x256xbf16>
    %23 = vector.shape_cast %22 : vector<1x4x256xbf16> to vector<4x256xbf16>
    %cst_27 = arith.constant dense<0.000000e+00> : vector<8x256xf32>
    %24 = tpu.matmul %21, %23, %cst_27 {dimension_numbers = #tpu.dot_dimension_numbers<[1], [0], [0], [1], [0, 0, 1, 1], [], []>} : vector<8x4xbf16>, vector<4x256xbf16>, vector<8x256xf32> -> vector<8x256xf32>
    %25 = arith.addf %19, %24 : vector<8x256xf32>
    %c0_28 = arith.constant 0 : index
    %c0_29 = arith.constant 0 : index
    %26 = vector.load %arg7[%c0_28, %c0_29] : memref<8x256xf32, #tpu.memory_space<vmem>>, vector<8x256xf32>
    tpu.vector_store %arg7[%c0_28, %c0_29], %25 {strides = array<i32>} : memref<8x256xf32, #tpu.memory_space<vmem>>, vector<8x256xf32>,
    %c0_30 = arith.constant 0 : index
    %c0_31 = arith.constant 0 : index
    %27 = vector.load %arg7[%c0_30, %c0_31] : memref<8x256xf32, #tpu.memory_space<vmem>>, vector<8x256xf32>
    %c3 = arith.constant 3 : index
    %c0_32 = arith.constant 0 : index
    %c0_33 = arith.constant 0 : index
    %28 = vector.load %arg4[%c3, %c0_32, %c0_33] : memref<9x8x4xbf16, #tpu.memory_space<vmem>>, vector<1x8x4xbf16>
    %29 = vector.shape_cast %28 : vector<1x8x4xbf16> to vector<8x4xbf16>
    %c0_34 = arith.constant 0 : index
    %c0_35 = arith.constant 0 : index
    %c16 = arith.constant 16 : index
    %30 = vector.load %arg3[%c0_34, %c0_35, %c16] : memref<1x4x384xbf16, #tpu.memory_space<vmem>>, vector<1x4x256xbf16>
    %31 = vector.shape_cast %30 : vector<1x4x256xbf16> to vector<4x256xbf16>
    %cst_36 = arith.constant dense<0.000000e+00> : vector<8x256xf32>
    %32 = tpu.matmul %29, %31, %cst_36 {dimension_numbers = #tpu.dot_dimension_numbers<[1], [0], [0], [1], [0, 0, 1, 1], [], []>} : vector<8x4xbf16>, vector<4x256xbf16>, vector<8x256xf32> -> vector<8x256xf32>
    %33 = arith.addf %27, %32 : vector<8x256xf32>
    %c0_37 = arith.constant 0 : index
    %c0_38 = arith.constant 0 : index
    %34 = vector.load %arg7[%c0_37, %c0_38] : memref<8x256xf32, #tpu.memory_space<vmem>>, vector<8x256xf32>
    tpu.vector_store %arg7[%c0_37, %c0_38], %33 {strides = array<i32>} : memref<8x256xf32, #tpu.memory_space<vmem>>, vector<8x256xf32>,
    %c0_39 = arith.constant 0 : index
    %c0_40 = arith.constant 0 : index
    %35 = vector.load %arg7[%c0_39, %c0_40] : memref<8x256xf32, #tpu.memory_space<vmem>>, vector<8x256xf32>
    %c4 = arith.constant 4 : index
    %c0_41 = arith.constant 0 : index
    %c0_42 = arith.constant 0 : index
    %36 = vector.load %arg4[%c4, %c0_41, %c0_42] : memref<9x8x4xbf16, #tpu.memory_space<vmem>>, vector<1x8x4xbf16>
    %37 = vector.shape_cast %36 : vector<1x8x4xbf16> to vector<8x4xbf16>
    %c0_43 = arith.constant 0 : index
    %c0_44 = arith.constant 0 : index
    %c17 = arith.constant 17 : index
    %38 = vector.load %arg3[%c0_43, %c0_44, %c17] : memref<1x4x384xbf16, #tpu.memory_space<vmem>>, vector<1x4x256xbf16>
    %39 = vector.shape_cast %38 : vector<1x4x256xbf16> to vector<4x256xbf16>
    %cst_45 = arith.constant dense<0.000000e+00> : vector<8x256xf32>
    %40 = tpu.matmul %37, %39, %cst_45 {dimension_numbers = #tpu.dot_dimension_numbers<[1], [0], [0], [1], [0, 0, 1, 1], [], []>} : vector<8x4xbf16>, vector<4x256xbf16>, vector<8x256xf32> -> vector<8x256xf32>
    %41 = arith.addf %35, %40 : vector<8x256xf32>
    %c0_46 = arith.constant 0 : index
    %c0_47 = arith.constant 0 : index
    %42 = vector.load %arg7[%c0_46, %c0_47] : memref<8x256xf32, #tpu.memory_space<vmem>>, vector<8x256xf32>
    tpu.vector_store %arg7[%c0_46, %c0_47], %41 {strides = array<i32>} : memref<8x256xf32, #tpu.memory_space<vmem>>, vector<8x256xf32>,
    %c0_48 = arith.constant 0 : index
    %c0_49 = arith.constant 0 : index
    %43 = vector.load %arg7[%c0_48, %c0_49] : memref<8x256xf32, #tpu.memory_space<vmem>>, vector<8x256xf32>
    %c5 = arith.constant 5 : index
    %c0_50 = arith.constant 0 : index
    %c0_51 = arith.constant 0 : index
    %44 = vector.load %arg4[%c5, %c0_50, %c0_51] : memref<9x8x4xbf16, #tpu.memory_space<vmem>>, vector<1x8x4xbf16>
    %45 = vector.shape_cast %44 : vector<1x8x4xbf16> to vector<8x4xbf16>
    %c0_52 = arith.constant 0 : index
    %c0_53 = arith.constant 0 : index
    %c18 = arith.constant 18 : index
    %46 = vector.load %arg3[%c0_52, %c0_53, %c18] : memref<1x4x384xbf16, #tpu.memory_space<vmem>>, vector<1x4x256xbf16>
    %47 = vector.shape_cast %46 : vector<1x4x256xbf16> to vector<4x256xbf16>
    %cst_54 = arith.constant dense<0.000000e+00> : vector<8x256xf32>
    %48 = tpu.matmul %45, %47, %cst_54 {dimension_numbers = #tpu.dot_dimension_numbers<[1], [0], [0], [1], [0, 0, 1, 1], [], []>} : vector<8x4xbf16>, vector<4x256xbf16>, vector<8x256xf32> -> vector<8x256xf32>
    %49 = arith.addf %43, %48 : vector<8x256xf32>
    %c0_55 = arith.constant 0 : index
    %c0_56 = arith.constant 0 : index
    %50 = vector.load %arg7[%c0_55, %c0_56] : memref<8x256xf32, #tpu.memory_space<vmem>>, vector<8x256xf32>
    tpu.vector_store %arg7[%c0_55, %c0_56], %49 {strides = array<i32>} : memref<8x256xf32, #tpu.memory_space<vmem>>, vector<8x256xf32>,
    %c0_57 = arith.constant 0 : index
    %c0_58 = arith.constant 0 : index
    %51 = vector.load %arg7[%c0_57, %c0_58] : memref<8x256xf32, #tpu.memory_space<vmem>>, vector<8x256xf32>
    %c6 = arith.constant 6 : index
    %c0_59 = arith.constant 0 : index
    %c0_60 = arith.constant 0 : index
    %52 = vector.load %arg4[%c6, %c0_59, %c0_60] : memref<9x8x4xbf16, #tpu.memory_space<vmem>>, vector<1x8x4xbf16>
    %53 = vector.shape_cast %52 : vector<1x8x4xbf16> to vector<8x4xbf16>
    %c0_61 = arith.constant 0 : index
    %c0_62 = arith.constant 0 : index
    %c32 = arith.constant 32 : index
    %54 = vector.load %arg3[%c0_61, %c0_62, %c32] : memref<1x4x384xbf16, #tpu.memory_space<vmem>>, vector<1x4x256xbf16>
    %55 = vector.shape_cast %54 : vector<1x4x256xbf16> to vector<4x256xbf16>
    %cst_63 = arith.constant dense<0.000000e+00> : vector<8x256xf32>
    %56 = tpu.matmul %53, %55, %cst_63 {dimension_numbers = #tpu.dot_dimension_numbers<[1], [0], [0], [1], [0, 0, 1, 1], [], []>} : vector<8x4xbf16>, vector<4x256xbf16>, vector<8x256xf32> -> vector<8x256xf32>
    %57 = arith.addf %51, %56 : vector<8x256xf32>
    %c0_64 = arith.constant 0 : index
    %c0_65 = arith.constant 0 : index
    %58 = vector.load %arg7[%c0_64, %c0_65] : memref<8x256xf32, #tpu.memory_space<vmem>>, vector<8x256xf32>
    tpu.vector_store %arg7[%c0_64, %c0_65], %57 {strides = array<i32>} : memref<8x256xf32, #tpu.memory_space<vmem>>, vector<8x256xf32>,
    %c0_66 = arith.constant 0 : index
    %c0_67 = arith.constant 0 : index
    %59 = vector.load %arg7[%c0_66, %c0_67] : memref<8x256xf32, #tpu.memory_space<vmem>>, vector<8x256xf32>
    %c7 = arith.constant 7 : index
    %c0_68 = arith.constant 0 : index
    %c0_69 = arith.constant 0 : index
    %60 = vector.load %arg4[%c7, %c0_68, %c0_69] : memref<9x8x4xbf16, #tpu.memory_space<vmem>>, vector<1x8x4xbf16>
    %61 = vector.shape_cast %60 : vector<1x8x4xbf16> to vector<8x4xbf16>
    %c0_70 = arith.constant 0 : index
    %c0_71 = arith.constant 0 : index
    %c33 = arith.constant 33 : index
    %62 = vector.load %arg3[%c0_70, %c0_71, %c33] : memref<1x4x384xbf16, #tpu.memory_space<vmem>>, vector<1x4x256xbf16>
    %63 = vector.shape_cast %62 : vector<1x4x256xbf16> to vector<4x256xbf16>
    %cst_72 = arith.constant dense<0.000000e+00> : vector<8x256xf32>
    %64 = tpu.matmul %61, %63, %cst_72 {dimension_numbers = #tpu.dot_dimension_numbers<[1], [0], [0], [1], [0, 0, 1, 1], [], []>} : vector<8x4xbf16>, vector<4x256xbf16>, vector<8x256xf32> -> vector<8x256xf32>
    %65 = arith.addf %59, %64 : vector<8x256xf32>
    %c0_73 = arith.constant 0 : index
    %c0_74 = arith.constant 0 : index
    %66 = vector.load %arg7[%c0_73, %c0_74] : memref<8x256xf32, #tpu.memory_space<vmem>>, vector<8x256xf32>
    tpu.vector_store %arg7[%c0_73, %c0_74], %65 {strides = array<i32>} : memref<8x256xf32, #tpu.memory_space<vmem>>, vector<8x256xf32>,
    %c0_75 = arith.constant 0 : index
    %c0_76 = arith.constant 0 : index
    %67 = vector.load %arg7[%c0_75, %c0_76] : memref<8x256xf32, #tpu.memory_space<vmem>>, vector<8x256xf32>
    %c8 = arith.constant 8 : index
    %c0_77 = arith.constant 0 : index
    %c0_78 = arith.constant 0 : index
    %68 = vector.load %arg4[%c8, %c0_77, %c0_78] : memref<9x8x4xbf16, #tpu.memory_space<vmem>>, vector<1x8x4xbf16>
    %69 = vector.shape_cast %68 : vector<1x8x4xbf16> to vector<8x4xbf16>
    %c0_79 = arith.constant 0 : index
    %c0_80 = arith.constant 0 : index
    %c34 = arith.constant 34 : index
    %70 = vector.load %arg3[%c0_79, %c0_80, %c34] : memref<1x4x384xbf16, #tpu.memory_space<vmem>>, vector<1x4x256xbf16>
    %71 = vector.shape_cast %70 : vector<1x4x256xbf16> to vector<4x256xbf16>
    %cst_81 = arith.constant dense<0.000000e+00> : vector<8x256xf32>
    %72 = tpu.matmul %69, %71, %cst_81 {dimension_numbers = #tpu.dot_dimension_numbers<[1], [0], [0], [1], [0, 0, 1, 1], [], []>} : vector<8x4xbf16>, vector<4x256xbf16>, vector<8x256xf32> -> vector<8x256xf32>
    %73 = arith.addf %67, %72 : vector<8x256xf32>
    %c0_82 = arith.constant 0 : index
    %c0_83 = arith.constant 0 : index
    %74 = vector.load %arg7[%c0_82, %c0_83] : memref<8x256xf32, #tpu.memory_space<vmem>>, vector<8x256xf32>
    tpu.vector_store %arg7[%c0_82, %c0_83], %73 {strides = array<i32>} : memref<8x256xf32, #tpu.memory_space<vmem>>, vector<8x256xf32>,
    %c0_i32_84 = arith.constant 0 : i32
    %75 = arith.cmpi eq, %arg2, %c0_i32_84 : i32
    %76 = arith.extui %75 : i1 to i32
    %c0_i32_85 = arith.constant 0 : i32
    %77 = arith.cmpi ne, %76, %c0_i32_85 : i32
    scf.if %77 {
      %c0_86 = arith.constant 0 : index
      %c0_87 = arith.constant 0 : index
      %78 = vector.load %arg7[%c0_86, %c0_87] : memref<8x256xf32, #tpu.memory_space<vmem>>, vector<8x256xf32>
      %cst_88 = arith.constant 0.235702261 : f32
      %79 = vector.broadcast %cst_88 : f32 to vector<8x256xf32>
      %80 = arith.mulf %78, %79 : vector<8x256xf32>
      %c0_89 = arith.constant 0 : index
      %c0_90 = arith.constant 0 : index
      %81 = vector.load %arg5[%c0_89, %c0_90] : memref<8x1xf32, #tpu.memory_space<vmem>>, vector<8x1xf32>
      %82 = vector.broadcast %81 : vector<8x1xf32> to vector<8x256xf32>
      %83 = arith.addf %80, %82 : vector<8x256xf32>
      %c0_91 = arith.constant 0 : index
      %c0_92 = arith.constant 0 : index
      %c0_93 = arith.constant 0 : index
      %84 = vector.load %arg6[%c0_91, %c0_92, %c0_93] : memref<1x8x256xf32, #tpu.memory_space<vmem>>, vector<1x8x256xf32>
      %85 = vector.shape_cast %84 : vector<1x8x256xf32> to vector<8x256xf32>
      %86 = vector.shape_cast %83 : vector<8x256xf32> to vector<1x8x256xf32>
      tpu.vector_store %arg6[%c0_91, %c0_92, %c0_93], %86 {strides = array<i32>} : memref<1x8x256xf32, #tpu.memory_space<vmem>>, vector<1x8x256xf32>,
    } else {
    }
    return
  }
  func.func @transform_0(%arg0: i32, %arg1: i32, %arg2: i32) -> (i32, i32, i32) {
    %c0_i32 = arith.constant 0 : i32
    %c0_i32_0 = arith.constant 0 : i32
    return %arg0, %arg2, %c0_i32 : i32, i32, i32
  }
  func.func @transform_1(%arg0: i32, %arg1: i32, %arg2: i32) -> (i32, i32, i32) {
    %c0_i32 = arith.constant 0 : i32
    %c0_i32_0 = arith.constant 0 : i32
    return %c0_i32, %arg1, %arg2 : i32, i32, i32
  }
  func.func @transform_2(%arg0: i32, %arg1: i32, %arg2: i32) -> (i32, i32) {
    %c0_i32 = arith.constant 0 : i32
    %c0_i32_0 = arith.constant 0 : i32
    return %arg1, %c0_i32 : i32, i32
  }
  func.func @transform_3(%arg0: i32, %arg1: i32, %arg2: i32) -> (i32, i32, i32) {
    %c0_i32 = arith.constant 0 : i32
    %c0_i32_0 = arith.constant 0 : i32
    return %arg0, %arg1, %c0_i32 : i32, i32, i32
  }
}

</mosaic_0001>

<bundles_post_ra>
// kernel: tpu_custom_call.1
= control target key start
LH: loop header
LB: loop body
LE: loop exit
PB: predicated region body
PF: predicated region fallthrough
CT: control target
= control target key end

     0   :  { %8 = vsyncpa [#allocation4], 0  ;;  %s1575_s0 = inlined_call_operand.vmem [shape: bf16[2,4,384], index: 0, kind: input, shape index: {}]   ;;  %s1576_s1 = inlined_call_operand.vmem [shape: bf16[9,8,4], index: 1, kind: input, shape index: {}]   ;;  %s1577_s2 = inlined_call_operand.vmem [shape: f32[8,1], index: 2, kind: input, shape index: {}]   ;;  %s1578_s3 = inlined_call_operand.hbm [shape: f32[2,8,256], index: 3, kind: output, shape index: {}]  }
   0x1   :  { %10 = vsyncpa [#allocation4 + $0x1], 0  ;;  %s1380_s12 = smov 0   ;;  %s1382_s13 = smov 0  }
   0x2   :  { %s1384_s14 = smov 0   ;;  %s1386_s15 = smov 0  }
   0x3   :  { %s1388_s16 = smov 0   ;;  %s1390_s17 = smov 0  }
   0x4 LB: > { %s1154_s18 = sadd.s32 4294967295, %s1347_s17   ;;  %s1155_s19 = sadd.s32 4294967294, %s1347_s17   ;;  %s1347_s17 = sphi %s1390_s17, %s16_s17   ;;  %s1343_s16 = sphi %s1388_s16, %s1585_s16   ;;  %s1339_s15 = sphi %s1386_s15, %s1584_s15   ;;  %s1335_s14 = sphi %s1384_s14, %s1583_s14   ;;  %s1331_s13 = sphi %s1382_s13, %s1582_s13   ;;  %s1327_s12 = sphi %s1380_s12, %s1581_s12  }
   0x5   : > { %s35_s20 = sadd.s32 1, %s1343_s16  ;;  %s126_s21 = sadd.s32 1, %s1335_s14 }
   0x6   : > { %p37_p0 = scmp.ge.s32.totalorder %s35_s20, 2  ;;  %p136_p1 = scmp.ne.s32.totalorder %s1335_s14, %s1331_s13 }
   0x7   : > { %p137_p2 = scmp.eq.s32.totalorder %s1154_s18, 1  ;;  %p142_p3 = scmp.ne.s32.totalorder %s1331_s13, %s1327_s12 }
   0x8   : > { %s1587_s20 = smov (%p37_p0, %s35_s20), 0  ;;  %p143_p5 = scmp.eq.s32.totalorder %s1155_s19, 1 }
   0x9   : > { %p1420_p4 = por %p137_p2, %p136_p1  ;;  %s121_s23 = ssub.s32 %s1343_s16, %s1587_s20 }
   0xa   : > { %p1160_p6 = scmp.ge.s32.totalorder %s1347_s17, 1  ;;  %p124_p7 = scmp.eq.s32.totalorder %s121_s23, 0 }
   0xb   : > { %p1427_p8 = por %p143_p5, %p142_p3  ;;  %p190_p9 = scmp.lt.s32.totalorder %s1347_s17, 3 }
   0xc   : > { %s1433_s25 = scalar_select %p124_p7, %s1335_s14, %s126_s21  }
   0xd   : > { %p191_p10 = pnand %p1160_p6, %p190_p9 }
   0xe   : > { %p229_p11 = scmp.lt.s32.totalorder (!%p191_p10), %s1339_s15, 1  ;;  %s1351_s4 = smov (!%p191_p10), 126  }
   0xf   : > { %194 = sbr.rel (%p191_p10) target bundleno = 407 (0x197), region = 32  ;;  %s1352_s5 = smov (!%p191_p10), 127  }
  0x10   : > { %s1353_s6 = smov (!%p191_p10), 112   ;;  %s1354_s9 = smov (!%p191_p10), 111  }
  0x11   : > { %s1355_s10 = smov (!%p191_p10), 110   ;;  %s1356_s11 = smov (!%p191_p10), 96  }
  0x12   : > { %s1357_s18 = smov (!%p191_p10), 95   ;;  %s1358_s19 = smov (!%p191_p10), 94  }
  0x13   : > { %s226_s23 = sand.u32 (!%p191_p10), 1, %s1331_s13  }
  0x14   : > { %v335_v0 = vlaneseq  ;;  %v1349_v1 = vmov 1983009808   ;;  %s230_s26 = scalar_select %p229_p11, %s1339_s15, 1  ;;  %v1350_v6 = vmov 0   ;;  %vm273_vm0 = vcmask 1041408   ;;  %v1012_v51 = vld [vmem:[%s1577_s2] sm:$0xff] }
  0x15   : > { %v333_v2 = vunpack.c.l.s4 %v1349_v1  ;;  %312 = vmatprep.mubr.bf16.mxu0 %v1350_v6  ;;  %397 = vmatprep.mubr.bf16.mxu1 %v1350_v6  ;;  %v258_v25 = vld [vmem:[%s1576_s1] sm:$0xf]  ;;  %vm269_vm1 = vcmask 31744   ;;  %vm353_vm2 = vcmask 1039360   ;;  %vm438_vm3 = vcmask 1031168  }
  0x16   : > { %v336_v3 = vshrl.u32 %v335_v0, 7  ;;  %s1196_s27 = smul.u32 6, %s230_s26  ;;  %1262 = vset.pattern.permute.xlu0 %v1350_v6  ;;  %v1166_v61 = vld [vmem:[%s1576_s1 + $0x4] sm:$0xf]  ;;  %vm523_vm4 = vcmask 916480   ;;  %vm608_vm5 = vcmask 908288  }
  0x17   : > { %v334_v4 = vunpack.c.0.s8 %v333_v2  ;;  %vm693_vm6 = vcmask 900096   ;;  %vm778_vm7 = vcmask 785408   ;;  %vm863_vm8 = vcmask 777216   ;;  %s1161_s26 = sshll.u32 %s226_s23, 4 }
  0x18   : > { %s1444_s30 = scalar_lea.vmem %s1575_s0, %s1196_s27  ;;  %vm948_vm9 = vcmask 769024   ;;  %s1195_s27 = sshll.u32 %s1339_s15, 8 }
  0x19   : > { %v1437_v5 = vsub.s32 %v334_v4, %v336_v3  ;;  %v414_v7 = vld [vmem:[%s1444_s30] sm:$0x3f]  ;;  %v1169_v4 = vld [vmem:[%s1576_s1 + $0x8] sm:$0xf]  ;;  %s228_s28 = scalar_lea.vmem [#allocation3], %s1161_s26  ;;  %s1359_s15 = smov [#allocation3]  }
  0x1a   : > { %v329_v8 = vld [vmem:[%s1444_s30] sm:$0x3f]  ;;  %v416_v13 = vcombine.high %v414_v7, %v414_v7  ;;  %s1039_s29 = sshll.u32 %s228_s28, 4  ;;  %s1275_s8 = sshll.u32 %s1359_s15, 4  ;;  %s1040_s29 = int_to_ptr.vmem [resolvable:$true] %s1039_s29  ;;  %s1276_s8 = int_to_ptr.vmem [resolvable:$false] %s1275_s8 }
  0x1b   : > { %v499_v9 = vld [vmem:[%s1444_s30] sm:$0x3f]  ;;  %v423_v10 = vrot.slane %v414_v7, %v1437_v5  ;;  %v338_v11 = vrot.slane %v329_v8, %v1437_v5  ;;  %v331_v12 = vcombine.high %v329_v8, %v329_v8  ;;  %s1271_s7 = scalar_lea.vmem %s1040_s29, 256  ;;  %p1278_p1 = scmp.lt.s32.totalorder %s1040_s29, %s1276_s8 }
  0x1c   : > { %v508_v14 = vrot.slane %v499_v9, %v1437_v5  ;;  %v1163_v16 = vld.sshfl [vmem:[%s1444_s30] sm:$0x33 pattern:$0x76325410]  ;;  %v430_v18 = vrot.slane %v416_v13, %v1437_v5  ;;  %v501_v23 = vcombine.high %v499_v9, %v499_v9  ;;  %p1272_p12 = scmp.ne.s32.totalorder %s1040_s29, %s1271_s7 }
  0x1d   : > { %432 = vrot.lane.b32.xlu1 %v423_v10, %s1351_s4  ;;  %347 = vrot.lane.b32.xlu0 %v338_v11, %s1352_s5  ;;  %v345_v15 = vrot.slane %v331_v12, %v1437_v5  ;;  %v346_v17 = vcombine.high %v338_v11, %v338_v11  ;;  %v268_v19 = vcombine.high %v1163_v16, %v1163_v16  ;;  %v275_v20 = vsel %vm273_vm0, %v1163_v16, 0  ;;  %v584_v24 = vld [vmem:[%s1444_s30] sm:$0x3f]  ;;  %v1175_v16 = vld [vmem:[%s1576_s1 + $0x10] sm:$0xf] }
  0x1e   : > { %v431_v21 = vcombine.high %v423_v10, %v423_v10  ;;  %v516_v22 = vcombine.high %v508_v14, %v508_v14  ;;  %v515_v26 = vrot.slane %v501_v23, %v1437_v5  ;;  %v593_v27 = vrot.slane %v584_v24, %v1437_v5  ;;  %v669_v29 = vld [vmem:[%s1444_s30] sm:$0x3f]  ;;  %v1172_v10 = vld [vmem:[%s1576_s1 + $0xc] sm:$0xf]  ;;  %p1273_p13 = pnand %p1272_p12, %p1420_p4 }
  0x1f   : > { %1164 = vmatprep.subr.msk.bf16.mxu0 %vm273_vm0, %v268_v19  ;;  %v586_v28 = vcombine.high %v584_v24, %v584_v24  ;;  %v678_v32 = vrot.slane %v669_v29, %v1437_v5  ;;  %v671_v34 = vcombine.high %v669_v29, %v669_v29  ;;  %v754_v35 = vld [vmem:[%s1444_s30] sm:$0x3f]  ;;  %v1178_v24 = vld [vmem:[%s1576_s1 + $0x14] sm:$0xf] }
  0x20   : > { %295 = vmatpush1.bf16.msra.mxu0 %v275_v20  ;;  %v601_v30 = vcombine.high %v593_v27, %v593_v27  ;;  %v763_v37 = vrot.slane %v754_v35, %v1437_v5  ;;  %v756_v38 = vcombine.high %v754_v35, %v754_v35  ;;  %v839_v39 = vld [vmem:[%s1444_s30] sm:$0x3f]  ;;  %p1274_p0 = pneg %p1273_p13 }
  0x21   : > { %517 = vrot.lane.b32.xlu0 %v508_v14, %s1353_s6  ;;  %351 = vrot.lane.b32.xlu1 %v345_v15, %s1352_s5  ;;  %v600_v31 = vrot.slane %v586_v28, %v1437_v5  ;;  %v686_v33 = vcombine.high %v678_v32, %v678_v32  ;;  %v685_v36 = vrot.slane %v671_v34, %v1437_v5  ;;  %v924_v45 = vld [vmem:[%s1444_s30] sm:$0x3f] }
  0x22   : > { %v771_v40 = vcombine.high %v763_v37, %v763_v37  ;;  %v770_v41 = vrot.slane %v756_v38, %v1437_v5  ;;  %v848_v42 = vrot.slane %v839_v39, %v1437_v5  ;;  %v841_v44 = vcombine.high %v839_v39, %v839_v39  ;;  %v1184_v38 = vld [vmem:[%s1576_s1 + $0x1c] sm:$0xf] }
  0x23   : > { %1165 = vmatmul.mubr.msk.bf16.vlgmr.msra.gmra.mxu0 %vm269_vm1, %v258_v25  ;;  %v933_v47 = vrot.slane %v924_v45, %v1437_v5  ;;  %v926_v48 = vcombine.high %v924_v45, %v924_v45 }
  0x24   : > { %482 = vmatprep.mubr.bf16.mxu0 %v1350_v6  ;;  %v856_v43 = vcombine.high %v848_v42, %v848_v42  ;;  %v855_v46 = vrot.slane %v841_v44, %v1437_v5 }
  0x25   : > { %349 = vrot.lane.b32.xlu0 %v346_v17, %s1352_s5  ;;  %436 = vrot.lane.b32.xlu1 %v430_v18, %s1351_s4  ;;  %v941_v49 = vcombine.high %v933_v47, %v933_v47  ;;  %v940_v50 = vrot.slane %v926_v48, %v1437_v5  ;;  %s1037_s5 = scalar_lea.hbm %s1578_s3, %s1195_s27 }
  0x29   : > { %434 = vrot.lane.b32.xlu0 %v431_v21, %s1351_s4  ;;  %519 = vrot.lane.b32.xlu1 %v516_v22, %s1353_s6 }
  0x2d   : > { %521 = vrot.lane.b32.xlu0 %v515_v26, %s1353_s6  ;;  %602 = vrot.lane.b32.xlu1 %v593_v27, %s1354_s9  ;;  %s1023_s6 = scalar_lea.sflag [#allocation4], %s226_s23 }
  0x31   : > { %604 = vrot.lane.b32.xlu0 %v601_v30, %s1354_s9  ;;  %606 = vrot.lane.b32.xlu1 %v600_v31, %s1354_s9  ;;  %v1181_v30 = vld [vmem:[%s1576_s1 + $0x18] sm:$0xf]  ;;  %s1277_s9 = scalar_lea.vmem %s1276_s8, 512 }
  0x32   : > { %p1279_p2 = scmp.lt.s32.totalorder %s1277_s9, %s1271_s7 }
  0x34   : > { %p1280_p3 = por %p1279_p2, %p1278_p1 }
  0x35   : > { %687 = vrot.lane.b32.xlu0 %v678_v32, %s1355_s10  ;;  %689 = vrot.lane.b32.xlu1 %v686_v33, %s1355_s10 }
  0x36   : > { %p1281_p5 = pnand %p1280_p3, %p1274_p0 }
  0x39   : > { %691 = vrot.lane.b32.xlu0 %v685_v36, %s1355_s10  ;;  %772 = vrot.lane.b32.xlu1 %v763_v37, %s1356_s11 }
  0x3d   : > { %774 = vrot.lane.b32.xlu0 %v771_v40, %s1356_s11  ;;  %776 = vrot.lane.b32.xlu1 %v770_v41, %s1356_s11 }
  0x41   : > { %857 = vrot.lane.b32.xlu0 %v848_v42, %s1357_s18  ;;  %859 = vrot.lane.b32.xlu1 %v856_v43, %s1357_s18 }
  0x45   : > { %861 = vrot.lane.b32.xlu0 %v855_v46, %s1357_s18  ;;  %942 = vrot.lane.b32.xlu1 %v933_v47, %s1358_s19 }
  0x49   : > { %944 = vrot.lane.b32.xlu0 %v941_v49, %s1358_s19  ;;  %946 = vrot.lane.b32.xlu1 %v940_v50, %s1358_s19 }
  0x4d   : > { %1015 = vperm.xlu0 %1262, %v1012_v51  }
  0x8f   : > { %v433_v52 = vpop.permute.xlu1 %432  ;;  %v348_v53 = vpop.permute.xlu0 %347 }
  0x93   : > { %v518_v54 = vpop.permute.xlu0 %517  ;;  %v352_v55 = vpop.permute.xlu1 %351 }
  0x97   : > { %v350_v56 = vpop.permute.xlu0 %349  ;;  %v437_v57 = vpop.permute.xlu1 %436 }
  0x98   : > { %v355_v58 = vsel %vm353_vm2, %v350_v56, %v352_v55  ;;  %v354_v59 = vsel %vm353_vm2, %v348_v53, %v350_v56 }
  0x99   : > { %1167 = vmatprep.subr.msk.bf16.mxu1 %vm273_vm0, %v355_v58  ;;  %v360_v60 = vsel %vm273_vm0, %v354_v59, 0 }
  0x9a   : > { %380 = vmatpush1.bf16.msra.mxu1 %v360_v60 }
  0x9b   : > { %v435_v62 = vpop.permute.xlu0 %434  ;;  %v520_v63 = vpop.permute.xlu1 %519 }
  0x9c   : > { %v439_v0 = vsel %vm438_vm3, %v433_v52, %v435_v62  ;;  %v440_v1 = vsel %vm438_vm3, %v435_v62, %v437_v57  ;;  %v524_v3 = vsel %vm523_vm4, %v518_v54, %v520_v63 }
  0x9d   : > { %v445_v2 = vsel %vm273_vm0, %v439_v0, 0  ;;  %1170 = vmatprep.subr.msk.bf16.mxu0 %vm273_vm0, %v440_v1  ;;  %1168 = vmatmul.mubr.msk.bf16.vlgmr.msra.gmra.mxu1 %vm269_vm1, %v1166_v61  ;;  %v530_v9 = vsel %vm273_vm0, %v524_v3, 0 }
  0x9e   : > { %465 = vmatpush1.bf16.msra.mxu0 %v445_v2  ;;  %567 = vmatprep.mubr.bf16.mxu1 %v1350_v6 }
  0x9f   : > { %v522_v5 = vpop.permute.xlu0 %521  ;;  %v603_v7 = vpop.permute.xlu1 %602 }
  0xa0   : > { %v525_v8 = vsel %vm523_vm4, %v520_v63, %v522_v5 }
  0xa1   : > { %1173 = vmatprep.subr.msk.bf16.mxu1 %vm273_vm0, %v525_v8  ;;  %1171 = vmatmul.mubr.msk.bf16.vlgmr.msra.gmra.mxu0 %vm269_vm1, %v1169_v4 }
  0xa2   : > { %550 = vmatpush1.bf16.msra.mxu1 %v530_v9  ;;  %652 = vmatprep.mubr.bf16.mxu0 %v1350_v6 }
  0xa3   : > { %v605_v11 = vpop.permute.xlu0 %604  ;;  %v607_v12 = vpop.permute.xlu1 %606 }
  0xa4   : > { %v609_v13 = vsel %vm608_vm5, %v603_v7, %v605_v11  ;;  %v610_v14 = vsel %vm608_vm5, %v605_v11, %v607_v12 }
  0xa5   : > { %v615_v15 = vsel %vm273_vm0, %v609_v13, 0  ;;  %1176 = vmatprep.subr.msk.bf16.mxu0 %vm273_vm0, %v610_v14  ;;  %1174 = vmatmul.mubr.msk.bf16.vlgmr.msra.gmra.mxu1 %vm269_vm1, %v1172_v10 }
  0xa6   : > { %635 = vmatpush1.bf16.msra.mxu0 %v615_v15  ;;  %737 = vmatprep.mubr.bf16.mxu1 %v1350_v6 }
  0xa7   : > { %v688_v17 = vpop.permute.xlu0 %687  ;;  %v690_v18 = vpop.permute.xlu1 %689 }
  0xa8   : > { %v694_v19 = vsel %vm693_vm6, %v688_v17, %v690_v18 }
  0xa9   : > { %1177 = vmatmul.mubr.msk.bf16.vlgmr.msra.gmra.mxu0 %vm269_vm1, %v1175_v16  ;;  %v700_v23 = vsel %vm273_vm0, %v694_v19, 0 }
  0xaa   : > { %822 = vmatprep.mubr.bf16.mxu0 %v1350_v6 }
  0xab   : > { %v692_v20 = vpop.permute.xlu0 %691  ;;  %v773_v21 = vpop.permute.xlu1 %772 }
  0xac   : > { %v695_v22 = vsel %vm693_vm6, %v690_v18, %v692_v20 }
  0xad   : > { %1179 = vmatprep.subr.msk.bf16.mxu1 %vm273_vm0, %v695_v22 }
  0xae   : > { %720 = vmatpush1.bf16.msra.mxu1 %v700_v23 }
  0xaf   : > { %v775_v25 = vpop.permute.xlu0 %774  ;;  %v777_v26 = vpop.permute.xlu1 %776 }
  0xb0   : > { %v779_v27 = vsel %vm778_vm7, %v773_v21, %v775_v25  ;;  %v780_v28 = vsel %vm778_vm7, %v775_v25, %v777_v26 }
  0xb1   : > { %v785_v29 = vsel %vm273_vm0, %v779_v27, 0  ;;  %1180 = vmatmul.mubr.msk.bf16.vlgmr.msra.gmra.mxu1 %vm269_vm1, %v1178_v24  ;;  %1182 = vmatprep.subr.msk.bf16.mxu0 %vm273_vm0, %v780_v28 }
  0xb2   : > { %805 = vmatpush1.bf16.msra.mxu0 %v785_v29  ;;  %907 = vmatprep.mubr.bf16.mxu1 %v1350_v6 }
  0xb3   : > { %v858_v31 = vpop.permute.xlu0 %857  ;;  %v860_v32 = vpop.permute.xlu1 %859 }
  0xb4   : > { %v864_v33 = vsel %vm863_vm8, %v858_v31, %v860_v32 }
  0xb5   : > { %1183 = vmatmul.mubr.msk.bf16.vlgmr.msra.gmra.mxu0 %vm269_vm1, %v1181_v30  ;;  %v870_v37 = vsel %vm273_vm0, %v864_v33, 0 }
  0xb6   : > { %992 = vmatprep.mubr.bf16.mxu0 %v1350_v6  ;;  %v1187_v6 = vld [vmem:[%s1576_s1 + $0x20] sm:$0xf] }
  0xb7   : > { %v862_v34 = vpop.permute.xlu0 %861  ;;  %v943_v35 = vpop.permute.xlu1 %942 }
  0xb8   : > { %v865_v36 = vsel %vm863_vm8, %v860_v32, %v862_v34 }
  0xb9   : > { %1185 = vmatprep.subr.msk.bf16.mxu1 %vm273_vm0, %v865_v36 }
  0xba   : > { %890 = vmatpush1.bf16.msra.mxu1 %v870_v37 }
  0xbb   : > { %v945_v39 = vpop.permute.xlu0 %944  ;;  %v947_v40 = vpop.permute.xlu1 %946 }
  0xbc   : > { %v949_v41 = vsel %vm948_vm9, %v943_v35, %v945_v39  ;;  %v950_v42 = vsel %vm948_vm9, %v945_v39, %v947_v40 }
  0xbd   : > { %v955_v43 = vsel %vm273_vm0, %v949_v41, 0  ;;  %1186 = vmatmul.mubr.msk.bf16.vlgmr.msra.gmra.mxu1 %vm269_vm1, %v1184_v38  ;;  %1188 = vmatprep.subr.msk.bf16.mxu0 %vm273_vm0, %v950_v42 }
  0xbe   : > { %975 = vmatpush1.bf16.msra.mxu0 %v955_v43 }
  0xc1   : > { %1189 = vmatmul.mubr.msk.bf16.vlgmr.msra.gmra.mxu0 %vm269_vm1, %v1187_v6 }
  0xc8   : > { %v1016_v28 = vpop.permute.xlu0 %1015 }
  0xe3   : > { %v314_v44 = vpop.f32.mrf.mxu0 }
  0xe5   : > { %v316_v45 = vpop.f32.mrf.mxu0 }
  0xe7   : > { %v318_v46 = vpop.f32.mrf.mxu0 }
  0xe9   : > { %v319_v47 = vpop.f32.mrf.mxu0 }
 0x15d   : > { %v399_v48 = vpop.f32.mrf.mxu1 }
 0x15e   : > { %v406_v0 = vadd.f32 %v399_v48, %v314_v44 }
 0x15f   : > { %v401_v49 = vpop.f32.mrf.mxu1 }
 0x160   : > { %v407_v3 = vadd.f32 %v401_v49, %v316_v45 }
 0x161   : > { %v484_v50 = vpop.f32.mrf.mxu0  ;;  %v403_v51 = vpop.f32.mrf.mxu1 }
 0x162   : > { %v491_v4 = vadd.f32 %v484_v50, %v406_v0 }
 0x163   : > { %v486_v52 = vpop.f32.mrf.mxu0  ;;  %v404_v53 = vpop.f32.mrf.mxu1 }
 0x164   : > { %v492_v10 = vadd.f32 %v486_v52, %v407_v3 }
 0x165   : > { %v488_v54 = vpop.f32.mrf.mxu0  ;;  %v569_v55 = vpop.f32.mrf.mxu1 }
 0x166   : > { %v576_v11 = vadd.f32 %v569_v55, %v491_v4 }
 0x167   : > { %v489_v56 = vpop.f32.mrf.mxu0  ;;  %v571_v57 = vpop.f32.mrf.mxu1 }
 0x168   : > { %v577_v13 = vadd.f32 %v571_v57, %v492_v10 }
 0x169   : > { %v654_v58 = vpop.f32.mrf.mxu0  ;;  %v573_v59 = vpop.f32.mrf.mxu1 }
 0x16a   : > { %v661_v14 = vadd.f32 %v654_v58, %v576_v11 }
 0x16b   : > { %v656_v60 = vpop.f32.mrf.mxu0  ;;  %v574_v61 = vpop.f32.mrf.mxu1 }
 0x16c   : > { %v662_v16 = vadd.f32 %v656_v60, %v577_v13 }
 0x16d   : > { %v658_v62 = vpop.f32.mrf.mxu0 }
 0x16f   : > { %v659_v63 = vpop.f32.mrf.mxu0 }
 0x171   : > { %v739_v1 = vpop.f32.mrf.mxu1 }
 0x172   : > { %v746_v17 = vadd.f32 %v739_v1, %v661_v14 }
 0x173   : > { %v741_v2 = vpop.f32.mrf.mxu1 }
 0x174   : > { %v747_v19 = vadd.f32 %v741_v2, %v662_v16 }
 0x175   : > { %v824_v5 = vpop.f32.mrf.mxu0  ;;  %v743_v7 = vpop.f32.mrf.mxu1 }
 0x176   : > { %v831_v20 = vadd.f32 %v824_v5, %v746_v17 }
 0x177   : > { %v826_v8 = vpop.f32.mrf.mxu0  ;;  %v744_v9 = vpop.f32.mrf.mxu1 }
 0x178   : > { %v832_v22 = vadd.f32 %v826_v8, %v747_v19 }
 0x179   : > { %v828_v12 = vpop.f32.mrf.mxu0 }
 0x17b   : > { %v829_v15 = vpop.f32.mrf.mxu0 }
 0x17d   : > { %v909_v18 = vpop.f32.mrf.mxu1 }
 0x17e   : > { %v916_v23 = vadd.f32 %v909_v18, %v831_v20 }
 0x17f   : > { %v911_v21 = vpop.f32.mrf.mxu1 }
 0x180   : > { %v917_v26 = vadd.f32 %v911_v21, %v832_v22 }
 0x181   : > { %v994_v24 = vpop.f32.mrf.mxu0  ;;  %v913_v25 = vpop.f32.mrf.mxu1 }
 0x182   : > { %v1001_v27 = vadd.f32 %v994_v24, %v916_v23 }
 0x183   : > { %v996_v29 = vpop.f32.mrf.mxu0  ;;  %v914_v30 = vpop.f32.mrf.mxu1 }
 0x184   : > { %v1010_v31 = vmul.f32 0.23570226, %v1001_v27  ;;  %v1002_v32 = vadd.f32 %v996_v29, %v917_v26 }
 0x185   : > { %v998_v33 = vpop.f32.mrf.mxu0 }
 0x186   : > { %v1011_v34 = vmul.f32 0.23570226, %v1002_v32  ;;  %v1018_v35 = vadd.f32 %v1016_v28, %v1010_v31 }
 0x187   : > { %v999_v36 = vpop.f32.mrf.mxu0 }
 0x188   : > { %v1019_v37 = vadd.f32 %v1016_v28, %v1011_v34  ;;  %1020 = vst [vmem:[%s228_s28] sm:$0xff] %v1018_v35 }
 0x18a   : > { %1021 = vst [vmem:[%s228_s28 + $0x8] sm:$0xff] %v1019_v37 }
 0x18b   : > { %1284 = shalt.err (!%p1281_p5)
}
 0x18c   : > { %s1285_s10 = scalar_lea.hbm %s1037_s5, 256  ;;  %s1289_s19 = scalar_lea.hbm %s1578_s3, 512 }
 0x18d   : > { %p1286_p6 = scmp.ne.s32.totalorder %s1037_s5, %s1285_s10  ;;  %p1290_p10 = scmp.lt.s32.totalorder %s1037_s5, %s1578_s3 }
 0x18e   : > { %p1291_p11 = scmp.lt.s32.totalorder %s1289_s19, %s1285_s10 }
 0x18f   : > { %p1287_p7 = pnand %p1286_p6, %p1420_p4 }
 0x190   : > { %p1292_p12 = por %p1291_p11, %p1290_p10 }
 0x191   : > { %p1288_p9 = pneg %p1287_p7 }
 0x193   : > { %p1293_p13 = pnand %p1292_p12, %p1288_p9 }
 0x195   : > { %1296 = shalt.err (!%p1293_p13)
}
 0x196   : > { %1197 = dma.vmem_to_hbm [thread:$0]  (%p1420_p4), %s1040_s29, 256, %s1037_s5, %s1023_s6  }
 0x197 PF: > { %p1203_p0 = scmp.ge.s32.totalorder %s1347_s17, 2  ;;  %s1051_s26 = sand.u32 1, %s1327_s12  }
 0x198   : > { %s1052_s27 = scalar_lea.sflag [#allocation4], %s1051_s26 }
 0x199   : > { %p1200_p1 = pnand %p1203_p0, %p1427_p8 }
 0x19b   : > { %p1201_p2 = pneg %p1200_p1 }
 0x19d   : > { %1322 = dma.done.wait (%p1201_p2), %s1052_s27, 256  }
 0x19e   : > { %1324 = vsyncadd (%p1201_p2), %s1052_s27, 4294967040  ;;  %s16_s17 = sadd.s32 1, %s1347_s17   ;;  %s1581_s12 = smov %s1331_s13 }
 0x19f   : > { %p13_p3 = scmp.ge.s32.totalorder %s16_s17, 4   ;;  %s1582_s13 = smov %s1335_s14 }
 0x1a0   : > { %s1583_s14 = smov %s1433_s25  ;;  %s1584_s15 = smov %s1343_s16 }
 0x1a1   : > { %s1585_s16 = smov %s1587_s20  ;;  %15 = sbr.rel (!%p13_p3) target bundleno = 4 (0x4), region = 89 }
 0x1a6   :  { %1057 = vsyncpa [#allocation4], 1 }
 0x1a7   :  { %1059 = vsyncpa [#allocation4 + $0x1], 1 }

</bundles_post_ra>
